<compile_context>
chip_gen: v5e
topology: v5e:2x2
jax: 0.10.0
libtpu: 0.0.40
codegen_flags: <defaults>
</compile_context>

<pallas_src>
import jax
import jax.numpy as jnp
from jax.experimental import pallas as pl
from jax.experimental.pallas import tpu as pltpu

_LANES = 128          # lane width of a vreg; last dim of the lane-dense slab
_ROW_TILE = 4096      # sublane tile for large N (multiple of 8; 2 MiB f32/block)


def _affine_kernel(w_ref, b_ref, x_ref, o_ref):
    # w_ref, b_ref: (1, 1) scalars in SMEM.  x_ref, o_ref: (rows, 128) VMEM tiles.
    w = w_ref[0, 0]
    b = b_ref[0, 0]
    o_ref[...] = x_ref[...] * w + b


def linear_regression_forward(x, weight, bias):
    """Forward of nn.Linear(1, 1).

    x: (N, 1) f32; weight: (1, 1) f32 (out_features, in_features); bias: (1,) f32.
    Returns (N, 1) f32.
    """
    n = x.shape[0]
    x_flat = x.reshape(-1).astype(jnp.float32)

    # Lane-dense slab: pad the flat vector to a multiple of 128 and view it as
    # (rows, 128).
    rows = pl.cdiv(n, _LANES)
    if rows <= _ROW_TILE:
        # Single block covering the whole (rows, 128) array (block dims ==
        # array dims, so no (8, 128) divisibility requirement).
        block_rows = rows
        grid_rows = 1
    else:
        # Tile the sublane axis; pad rows up to a multiple of the row tile.
        block_rows = _ROW_TILE
        rows = pl.cdiv(rows, _ROW_TILE) * _ROW_TILE
        grid_rows = rows // _ROW_TILE

    padded = rows * _LANES
    x_slab = jnp.pad(x_flat, (0, padded - n)).reshape(rows, _LANES)

    w2d = weight.reshape(1, 1).astype(jnp.float32)
    b2d = bias.reshape(1, 1).astype(jnp.float32)

    out_slab = pl.pallas_call(
        _affine_kernel,
        out_shape=jax.ShapeDtypeStruct((rows, _LANES), jnp.float32),
        grid=(grid_rows,),
        in_specs=[
            pl.BlockSpec(memory_space=pltpu.MemorySpace.SMEM),  # weight scalar
            pl.BlockSpec(memory_space=pltpu.MemorySpace.SMEM),  # bias scalar
            pl.BlockSpec((block_rows, _LANES), lambda i: (i, 0)),
        ],
        out_specs=pl.BlockSpec((block_rows, _LANES), lambda i: (i, 0)),
        compiler_params=pltpu.CompilerParams(
            dimension_semantics=("parallel",),
        ),
    )(w2d, b2d, x_slab)

    # Unpad and restore the (N, 1) PyTorch layout.
    return out_slab.reshape(-1)[:n].reshape(n, 1)


if __name__ == "__main__":
    # Deterministic parameter init mimicking nn.Linear(1, 1) shapes.
    key = jax.random.PRNGKey(0)
    k_w, k_b = jax.random.split(key)
    # nn.Linear(1, 1) uses U(-1, 1) (1/sqrt(in_features) = 1).
    weight = jax.random.uniform(k_w, (1, 1), jnp.float32, minval=-1.0, maxval=1.0)
    bias = jax.random.uniform(k_b, (1,), jnp.float32, minval=-1.0, maxval=1.0)

    # Input matching the original script: x = linspace(0, 10, 100).reshape(-1, 1)
    x = jnp.linspace(0.0, 10.0, 100, dtype=jnp.float32).reshape(-1, 1)

    y = linear_regression_forward(x, weight, bias)
    y = jax.block_until_ready(y)

    # Reference check in plain JAX (same semantics as PyTorch nn.Linear).
    y_ref = x @ weight.T + bias
    assert y.shape == (100, 1)
    assert jnp.allclose(y, y_ref, atol=1e-6), "mismatch vs reference"

    print("KERNEL_OK")
</pallas_src>

<mosaic_0001>
module attributes {stable_mosaic.version = 11 : i64} {
  func.func @_affine_kernel(%arg0: i32, %arg1: memref<1x1xf32, #tpu.memory_space<smem>>, %arg2: memref<1x1xf32, #tpu.memory_space<smem>>, %arg3: memref<1x128xf32, #tpu.memory_space<vmem>>, %arg4: memref<1x128xf32, #tpu.memory_space<vmem>>) attributes {dimension_semantics = [#tpu.dimension_semantics<parallel>], iteration_bounds = array<i64: 1>, scalar_prefetch = 0 : i64, scratch_operands = 0 : i64, tpu.core_type = #tpu.core_type<tc>, window_params = [{transform_indices = @transform_0, window_bounds = array<i64: 1, 1>}, {transform_indices = @transform_1, window_bounds = array<i64: 1, 1>}, {transform_indices = @transform_2, window_bounds = array<i64: 1, 128>}, {transform_indices = @transform_3, window_bounds = array<i64: 1, 128>}]} {
    %c0 = arith.constant 0 : index
    %c0_0 = arith.constant 0 : index
    %0 = memref.load %arg1[%c0, %c0_0] : memref<1x1xf32, #tpu.memory_space<smem>>
    %c0_1 = arith.constant 0 : index
    %c0_2 = arith.constant 0 : index
    %1 = memref.load %arg2[%c0_1, %c0_2] : memref<1x1xf32, #tpu.memory_space<smem>>
    %c0_3 = arith.constant 0 : index
    %c0_4 = arith.constant 0 : index
    %2 = vector.load %arg3[%c0_3, %c0_4] : memref<1x128xf32, #tpu.memory_space<vmem>>, vector<1x128xf32>
    %3 = vector.broadcast %0 : f32 to vector<1x128xf32>
    %4 = arith.mulf %2, %3 : vector<1x128xf32>
    %5 = vector.broadcast %1 : f32 to vector<1x128xf32>
    %6 = arith.addf %4, %5 : vector<1x128xf32>
    %c0_5 = arith.constant 0 : index
    %c0_6 = arith.constant 0 : index
    %7 = vector.load %arg4[%c0_5, %c0_6] : memref<1x128xf32, #tpu.memory_space<vmem>>, vector<1x128xf32>
    tpu.vector_store %arg4[%c0_5, %c0_6], %6 {strides = array<i32>} : memref<1x128xf32, #tpu.memory_space<vmem>>, vector<1x128xf32>,
    return
  }
  func.func @transform_0(%arg0: i32) -> (i32, i32) {
    %c0_i32 = arith.constant 0 : i32
    %c0_i32_0 = arith.constant 0 : i32
    %c0_i32_1 = arith.constant 0 : i32
    return %c0_i32, %c0_i32_0 : i32, i32
  }
  func.func @transform_1(%arg0: i32) -> (i32, i32) {
    %c0_i32 = arith.constant 0 : i32
    %c0_i32_0 = arith.constant 0 : i32
    %c0_i32_1 = arith.constant 0 : i32
    return %c0_i32, %c0_i32_0 : i32, i32
  }
  func.func @transform_2(%arg0: i32) -> (i32, i32) {
    %c0_i32 = arith.constant 0 : i32
    %c0_i32_0 = arith.constant 0 : i32
    return %arg0, %c0_i32 : i32, i32
  }
  func.func @transform_3(%arg0: i32) -> (i32, i32) {
    %c0_i32 = arith.constant 0 : i32
    %c0_i32_0 = arith.constant 0 : i32
    return %arg0, %c0_i32 : i32, i32
  }
}

</mosaic_0001>

<bundles_post_ra>
// kernel: tpu_custom_call.1
= control target key start
LH: loop header
LB: loop body
LE: loop exit
PB: predicated region body
PF: predicated region fallthrough
CT: control target
= control target key end

     0   :  { %s101_s0 = inlined_call_operand.<no memory space> [shape: f32[1,1], index: 0, kind: input, shape index: {}]   ;;  %s102_s1 = inlined_call_operand.<no memory space> [shape: f32[1,1], index: 1, kind: input, shape index: {}]   ;;  %s103_s2 = inlined_call_operand.vmem [shape: f32[1,128], index: 2, kind: input, shape index: {}]   ;;  %s104_s3 = inlined_call_operand.hbm [shape: f32[1,128], index: 3, kind: output, shape index: {}]  }
   0x1   :  { %v19_v0 = vld [vmem:[%s103_s2] sm:$0x1]  ;;  %v20_v1 = vstv %s101_s0  ;;  %v22_v2 = vstv %s102_s1 }
   0x2   :  { %10 = vsyncpa [#allocation5], 0  ;;  %s32_s20 = sshll.u32 %s104_s3, 4  ;;  %v21_v3 = vmul.f32 %v20_v1, %v19_v0  ;;  %s68_s21 = smov [#allocation4]   ;;  %s33_s20 = int_to_ptr.hbm [resolvable:$true] %s32_s20 }
   0x3   :  { %s30_s22 = sshll.u32 %s68_s21, 4  ;;  %s31_s22 = int_to_ptr.vmem [resolvable:$true] %s30_s22 }
   0x4   :  { %v23_v4 = vadd.f32 %v22_v2, %v21_v3 }
   0x6   :  { %24 = vst [vmem:[#allocation4] sm:$0x1] %v23_v4 }
   0x7   :  { %35 = dma.vmem_to_hbm [thread:$0]  %s31_s22, 16, %s33_s20, [#allocation5]  }
   0x8   :  { %66 = dma.done.wait [#allocation5], 16  }
   0x9   :  { %67 = vsyncadd [#allocation5], 4294967280 }
   0xa   :  { %40 = vsyncpa [#allocation5], 1 }

</bundles_post_ra>
